<compile_context>
chip_gen: v5e
topology: v5e:2x2
jax: 0.10.0
libtpu: 0.0.40
codegen_flags: <defaults>
</compile_context>

<pallas_src>
import functools
import math

import jax
import jax.numpy as jnp
from jax.experimental import pallas as pl
from jax.experimental.pallas import tpu as pltpu

NUM_MODELS = 5


def ensemble_kernel(x_ref, w_ref, b_ref, mean_ref, var_ref):
    """One (R, t) slab of packed pixels: all 5 models + ensemble reduction.

    x_ref:    (1, R, t)       packed activations (R = C*G rows, spatial on lanes)
    w_ref:    ((M+1)*R, R)    block-diagonal weights: M models + mean block
    b_ref:    ((M+1)*R, 1)    matching biases
    mean_ref: (1, R, t)       ensemble mean (pre-sigmoid)
    var_ref:  (1, R, t)       mean(sigmoid(y_m)^2) - sigmoid(mean)
    """
    x = x_ref[0]                          # (R, t) f32
    w = w_ref[...]                        # ((M+1)R, R)
    b = b_ref[...]                        # ((M+1)R, 1)
    R = x.shape[0]
    n_models = w.shape[0] // R - 1

    # One MXU matmul produces every model's 1x1-conv output AND the ensemble
    # mean (last R rows use averaged weights/bias).  f32 kept exact.
    y = jnp.dot(w, x,
                precision=jax.lax.Precision.HIGHEST,
                preferred_element_type=jnp.float32) + b        # ((M+1)R, t)
    z = jax.nn.sigmoid(y)                                      # preds + sigmoid(mean)

    mean = y[n_models * R:, :]                                 # 8-row aligned slice
    mean_ref[0] = mean

    # variance = mean_m(sigmoid(y_m)^2) - sigmoid(mean)
    sum_p2 = jnp.zeros_like(mean)
    for m in range(n_models):                                  # static unroll, aligned slices
        pm = z[m * R:(m + 1) * R, :]
        sum_p2 = sum_p2 + pm * pm
    var_ref[0] = sum_p2 * jnp.float32(1.0 / n_models) - z[n_models * R:, :]


@functools.partial(jax.jit, static_argnames=("tile_hw",))
def my_ensemble_forward(x_nchw, weights, biases, *, tile_hw=2048):
    """x_nchw: (B, C, H, W) f32; weights: (5, C, C) (out, in); biases: (5, C).

    Returns (mean, variance), both (B, C, H, W) float32.
    """
    x_nchw = x_nchw.astype(jnp.float32)
    weights = weights.astype(jnp.float32)
    biases = biases.astype(jnp.float32)

    B, C, H, W = x_nchw.shape
    M = weights.shape[0]
    HW = H * W

    # Pack channels up to a multiple of 8 sublanes by splitting the spatial
    # axis: (B, C, HW) -> (B, C*G, HW/G) is a free row-major view.
    G = 8 // math.gcd(C, 8)
    if HW % G != 0:
        G = 1                      # fallback: still correct, just half-filled sublanes
    R = C * G
    HW_G = HW // G
    x = x_nchw.reshape(B, R, HW_G)

    # Lane-aligned spatial tile; pad the tail instead of asserting.
    t = max(128, min(tile_hw, pl.cdiv(HW_G, 128) * 128))
    t = pl.cdiv(t, 128) * 128
    HW_pad = pl.cdiv(HW_G, t) * t
    if HW_pad != HW_G:
        x = jnp.pad(x, ((0, 0), (0, 0), (0, HW_pad - HW_G)))

    # Fused weights: each model's 1x1 conv replicated block-diagonally across
    # the G spatial groups, all M models stacked on the output-row axis, plus
    # one extra R-row block holding the model-averaged weights/bias (its rows
    # ARE the ensemble mean).
    eye_g = jnp.eye(G, dtype=jnp.float32)
    w_pack = jnp.einsum("moc,gh->mogch", weights, eye_g).reshape(M, R, R)
    w_all = jnp.concatenate([w_pack, jnp.mean(w_pack, axis=0, keepdims=True)], 0)
    w_all = w_all.reshape((M + 1) * R, R)
    b_pack = jnp.repeat(biases, G, axis=1)                               # (M, R)
    b_all = jnp.concatenate([b_pack, jnp.mean(b_pack, axis=0, keepdims=True)], 0)
    b_all = b_all.reshape((M + 1) * R, 1)

    grid = (B, HW_pad // t)
    cost = pl.CostEstimate(
        flops=2 * (M + 1) * R * R * B * HW_pad,
        transcendentals=(M + 1) * R * B * HW_pad,
        bytes_accessed=(3 * B * R * HW_pad + (M + 1) * R * (R + 1)) * 4,
    )

    mean_flat, var_flat = pl.pallas_call(
        ensemble_kernel,
        out_shape=(
            jax.ShapeDtypeStruct((B, R, HW_pad), jnp.float32),
            jax.ShapeDtypeStruct((B, R, HW_pad), jnp.float32),
        ),
        grid_spec=pltpu.PrefetchScalarGridSpec(
            num_scalar_prefetch=0,
            grid=grid,
            in_specs=[
                pl.BlockSpec((1, R, t), lambda b, i: (b, 0, i)),
                # Constant-index weight/bias blocks: fetched once, stay resident.
                pl.BlockSpec(((M + 1) * R, R), lambda b, i: (0, 0)),
                pl.BlockSpec(((M + 1) * R, 1), lambda b, i: (0, 0)),
            ],
            out_specs=[
                pl.BlockSpec((1, R, t), lambda b, i: (b, 0, i)),
                pl.BlockSpec((1, R, t), lambda b, i: (b, 0, i)),
            ],
        ),
        compiler_params=pltpu.CompilerParams(
            dimension_semantics=("parallel", "parallel"),
            vmem_limit_bytes=32 * 1024 * 1024,
        ),
        cost_estimate=cost,
    )(x, w_all, b_all)

    # Free views back to NCHW.
    mean = mean_flat[:, :, :HW_G].reshape(B, C, H, W)
    variance = var_flat[:, :, :HW_G].reshape(B, C, H, W)
    return mean, variance


def reference_forward(x_nchw, weights, biases):
    """Pure-JAX reference mirroring the PyTorch ensemble semantics (f32)."""
    outs = jnp.stack([
        jnp.einsum("bchw,oc->bohw", x_nchw, weights[m])
        + biases[m][None, :, None, None]
        for m in range(NUM_MODELS)
    ])                                                  # (5, B, C, H, W)
    mean = jnp.mean(outs, axis=0)
    pred = jax.nn.sigmoid(outs)
    mean_pred = jax.nn.sigmoid(mean)
    variance = jnp.mean(pred ** 2 - mean_pred, axis=0)
    return mean, variance


if __name__ == "__main__":
    key = jax.random.PRNGKey(0)
    kx, kw, kb = jax.random.split(key, 3)

    B, C, H, W = 2, 4, 16, 16
    x = jax.random.normal(kx, (B, C, H, W), dtype=jnp.float32)
    # Deterministic synthetic weights for the 5 ensemble members (1x1 convs).
    weights = 0.5 * jax.random.normal(kw, (NUM_MODELS, C, C), dtype=jnp.float32)
    biases = 0.1 * jax.random.normal(kb, (NUM_MODELS, C), dtype=jnp.float32)

    mean_out, var_out = my_ensemble_forward(x, weights, biases)
    jax.block_until_ready((mean_out, var_out))

    mean_ref, var_ref = reference_forward(x, weights, biases)
    assert mean_out.shape == (B, C, H, W) and var_out.shape == (B, C, H, W)
    assert jnp.allclose(mean_out, mean_ref, atol=1e-4, rtol=1e-4), float(
        jnp.max(jnp.abs(mean_out - mean_ref)))
    assert jnp.allclose(var_out, var_ref, atol=1e-4, rtol=1e-4), float(
        jnp.max(jnp.abs(var_out - var_ref)))

    print("KERNEL_OK")
</pallas_src>

<mosaic_0001>
module attributes {stable_mosaic.version = 11 : i64} {
  func.func @ensemble_kernel(%arg0: i32, %arg1: i32, %arg2: memref<1x8x128xf32, #tpu.memory_space<vmem>>, %arg3: memref<48x8xf32, #tpu.memory_space<vmem>>, %arg4: memref<48x1xf32, #tpu.memory_space<vmem>>, %arg5: memref<1x8x128xf32, #tpu.memory_space<vmem>>, %arg6: memref<1x8x128xf32, #tpu.memory_space<vmem>>) attributes {dimension_semantics = [#tpu.dimension_semantics<parallel>, #tpu.dimension_semantics<parallel>], iteration_bounds = array<i64: 2, 1>, scalar_prefetch = 0 : i64, scratch_operands = 0 : i64, tpu.core_type = #tpu.core_type<tc>, window_params = [{transform_indices = @transform_0, window_bounds = array<i64: 1, 8, 128>}, {pipeline_mode = #tpu.pipeline_mode<synchronous>, transform_indices = @transform_1, window_bounds = array<i64: 48, 8>}, {pipeline_mode = #tpu.pipeline_mode<synchronous>, transform_indices = @transform_2, window_bounds = array<i64: 48, 1>}, {transform_indices = @transform_3, window_bounds = array<i64: 1, 8, 128>}, {transform_indices = @transform_4, window_bounds = array<i64: 1, 8, 128>}]} {
    %c0 = arith.constant 0 : index
    %c0_0 = arith.constant 0 : index
    %c0_1 = arith.constant 0 : index
    %0 = vector.load %arg2[%c0, %c0_0, %c0_1] : memref<1x8x128xf32, #tpu.memory_space<vmem>>, vector<1x8x128xf32>
    %1 = vector.shape_cast %0 : vector<1x8x128xf32> to vector<8x128xf32>
    %c0_2 = arith.constant 0 : index
    %c0_3 = arith.constant 0 : index
    %2 = vector.load %arg3[%c0_2, %c0_3] : memref<48x8xf32, #tpu.memory_space<vmem>>, vector<48x8xf32>
    %c0_4 = arith.constant 0 : index
    %c0_5 = arith.constant 0 : index
    %3 = vector.load %arg4[%c0_4, %c0_5] : memref<48x1xf32, #tpu.memory_space<vmem>>, vector<48x1xf32>
    %cst = arith.constant dense<0.000000e+00> : vector<48x128xf32>
    %4 = tpu.matmul %2, %1, %cst {dimension_numbers = #tpu.dot_dimension_numbers<[1], [0], [0], [1], [0, 0, 1, 1], [], []>, precision = #tpu.contract_precision<fp32>} : vector<48x8xf32>, vector<8x128xf32>, vector<48x128xf32> -> vector<48x128xf32>
    %5 = vector.broadcast %3 : vector<48x1xf32> to vector<48x128xf32>
    %6 = arith.addf %4, %5 : vector<48x128xf32>
    %7 = arith.negf %6 : vector<48x128xf32>
    %8 = math.exp %7 : vector<48x128xf32>
    %cst_6 = arith.constant 1.000000e+00 : f32
    %9 = vector.broadcast %cst_6 : f32 to vector<48x128xf32>
    %10 = arith.addf %9, %8 : vector<48x128xf32>
    %11 = arith.divf %9, %10 : vector<48x128xf32>
    %12 = vector.extract_strided_slice %6 {offsets = [40, 0], sizes = [8, 128], strides = [1, 1]} : vector<48x128xf32> to vector<8x128xf32>
    %c0_7 = arith.constant 0 : index
    %c0_8 = arith.constant 0 : index
    %c0_9 = arith.constant 0 : index
    %13 = vector.load %arg5[%c0_7, %c0_8, %c0_9] : memref<1x8x128xf32, #tpu.memory_space<vmem>>, vector<1x8x128xf32>
    %14 = vector.shape_cast %13 : vector<1x8x128xf32> to vector<8x128xf32>
    %15 = vector.shape_cast %12 : vector<8x128xf32> to vector<1x8x128xf32>
    tpu.vector_store %arg5[%c0_7, %c0_8, %c0_9], %15 {strides = array<i32>} : memref<1x8x128xf32, #tpu.memory_space<vmem>>, vector<1x8x128xf32>,
    %cst_10 = arith.constant 0.000000e+00 : f32
    %16 = vector.broadcast %cst_10 : f32 to vector<8x128xf32>
    %17 = vector.extract_strided_slice %11 {offsets = [0, 0], sizes = [8, 128], strides = [1, 1]} : vector<48x128xf32> to vector<8x128xf32>
    %18 = arith.mulf %17, %17 : vector<8x128xf32>
    %19 = arith.addf %16, %18 : vector<8x128xf32>
    %20 = vector.extract_strided_slice %11 {offsets = [8, 0], sizes = [8, 128], strides = [1, 1]} : vector<48x128xf32> to vector<8x128xf32>
    %21 = arith.mulf %20, %20 : vector<8x128xf32>
    %22 = arith.addf %19, %21 : vector<8x128xf32>
    %23 = vector.extract_strided_slice %11 {offsets = [16, 0], sizes = [8, 128], strides = [1, 1]} : vector<48x128xf32> to vector<8x128xf32>
    %24 = arith.mulf %23, %23 : vector<8x128xf32>
    %25 = arith.addf %22, %24 : vector<8x128xf32>
    %26 = vector.extract_strided_slice %11 {offsets = [24, 0], sizes = [8, 128], strides = [1, 1]} : vector<48x128xf32> to vector<8x128xf32>
    %27 = arith.mulf %26, %26 : vector<8x128xf32>
    %28 = arith.addf %25, %27 : vector<8x128xf32>
    %29 = vector.extract_strided_slice %11 {offsets = [32, 0], sizes = [8, 128], strides = [1, 1]} : vector<48x128xf32> to vector<8x128xf32>
    %30 = arith.mulf %29, %29 : vector<8x128xf32>
    %31 = arith.addf %28, %30 : vector<8x128xf32>
    %cst_11 = arith.constant 2.000000e-01 : f32
    %32 = vector.broadcast %cst_11 : f32 to vector<8x128xf32>
    %33 = arith.mulf %31, %32 : vector<8x128xf32>
    %34 = vector.extract_strided_slice %11 {offsets = [40, 0], sizes = [8, 128], strides = [1, 1]} : vector<48x128xf32> to vector<8x128xf32>
    %35 = arith.subf %33, %34 : vector<8x128xf32>
    %c0_12 = arith.constant 0 : index
    %c0_13 = arith.constant 0 : index
    %c0_14 = arith.constant 0 : index
    %36 = vector.load %arg6[%c0_12, %c0_13, %c0_14] : memref<1x8x128xf32, #tpu.memory_space<vmem>>, vector<1x8x128xf32>
    %37 = vector.shape_cast %36 : vector<1x8x128xf32> to vector<8x128xf32>
    %38 = vector.shape_cast %35 : vector<8x128xf32> to vector<1x8x128xf32>
    tpu.vector_store %arg6[%c0_12, %c0_13, %c0_14], %38 {strides = array<i32>} : memref<1x8x128xf32, #tpu.memory_space<vmem>>, vector<1x8x128xf32>,
    return
  }
  func.func @transform_0(%arg0: i32, %arg1: i32) -> (i32, i32, i32) {
    %c0_i32 = arith.constant 0 : i32
    %c0_i32_0 = arith.constant 0 : i32
    return %arg0, %c0_i32, %arg1 : i32, i32, i32
  }
  func.func @transform_1(%arg0: i32, %arg1: i32) -> (i32, i32) {
    %c0_i32 = arith.constant 0 : i32
    %c0_i32_0 = arith.constant 0 : i32
    %c0_i32_1 = arith.constant 0 : i32
    return %c0_i32, %c0_i32_0 : i32, i32
  }
  func.func @transform_2(%arg0: i32, %arg1: i32) -> (i32, i32) {
    %c0_i32 = arith.constant 0 : i32
    %c0_i32_0 = arith.constant 0 : i32
    %c0_i32_1 = arith.constant 0 : i32
    return %c0_i32, %c0_i32_0 : i32, i32
  }
  func.func @transform_3(%arg0: i32, %arg1: i32) -> (i32, i32, i32) {
    %c0_i32 = arith.constant 0 : i32
    %c0_i32_0 = arith.constant 0 : i32
    return %arg0, %c0_i32, %arg1 : i32, i32, i32
  }
  func.func @transform_4(%arg0: i32, %arg1: i32) -> (i32, i32, i32) {
    %c0_i32 = arith.constant 0 : i32
    %c0_i32_0 = arith.constant 0 : i32
    return %arg0, %c0_i32, %arg1 : i32, i32, i32
  }
}

</mosaic_0001>

<bundles_post_ra>
// kernel: my_ensemble_forward.1
= control target key start
LH: loop header
LB: loop body
LE: loop exit
PB: predicated region body
PF: predicated region fallthrough
CT: control target
= control target key end

     0   :  { %s969_s15 = smov 0   ;;  %s971_s16 = smov 0   ;;  %s1197_s0 = inlined_call_operand.vmem [shape: f32[2,8,128], index: 0, kind: input, shape index: {}]   ;;  %s1198_s1 = inlined_call_operand.vmem [shape: f32[48,8], index: 1, kind: input, shape index: {}]   ;;  %s1199_s2 = inlined_call_operand.vmem [shape: f32[48,1], index: 2, kind: input, shape index: {}]   ;;  %s1200_s3 = inlined_call_operand.vmem [shape: f32[2,8,128], index: 3, kind: output, shape index: {0}]   ;;  %s1201_s4 = inlined_call_operand.vmem [shape: f32[2,8,128], index: 4, kind: output, shape index: {1}]  }
   0x1   :  { %s973_s17 = smov 0  }
   0x2 LB: > { %s27_s18 = sadd.s32 1, %s937_s16  ;;  %p853_p0 = scmp.ge.s32.totalorder %s941_s17, 1  ;;  %s941_s17 = sphi %s973_s17, %s15_s17   ;;  %s937_s16 = sphi %s971_s16, %s1209_s16   ;;  %s933_s15 = sphi %s969_s15, %s1208_s15  }
   0x3   : > { %p29_p1 = scmp.ge.s32.totalorder %s27_s18, 2  ;;  %p185_p2 = scmp.lt.s32.totalorder %s941_s17, 3 }
   0x5   : > { %s1211_s18 = smov (%p29_p1, %s27_s18), 0  ;;  %p186_p3 = pnand %p853_p0, %p185_p2 }
   0x6   : > { %p222_p4 = scmp.lt.s32.totalorder (!%p186_p3), %s933_s15, 1 }
   0x7   : > { %189 = sbr.rel (%p186_p3) target bundleno = 264 (0x108), region = 32 }
   0xc   : > { %v247_v0 = vld [vmem:[%s1198_s1 + $0x18] sm:$0xff]  ;;  %vm286_vm0 = vcmask 64512   ;;  %v248_v1 = vld [vmem:[%s1198_s1 + $0x20] sm:$0xff]  ;;  %v252_v2 = vld [vmem:[%s1199_s2 + $0x10] sm:$0xff]  ;;  %v943_v5 = vmov 0   ;;  %s1213_s15 = smov (!%p222_p4, %s933_s15), 1 }
   0xd   : > { %v297_v3 = vsel %vm286_vm0, %v247_v0, 0  ;;  %v300_v4 = vsel %vm286_vm0, %v248_v1, 0  ;;  %893 = vset.pattern.permute.xlu1 %v943_v5  ;;  %v244_v6 = vld [vmem:[%s1198_s1] sm:$0xff]  ;;  %892 = vset.pattern.permute.xlu0 %v943_v5  ;;  %v249_v10 = vld [vmem:[%s1198_s1 + $0x28] sm:$0xff]  ;;  %v246_v14 = vld [vmem:[%s1198_s1 + $0x10] sm:$0xff]  ;;  %s1018_s7 = sshll.u32 %s1213_s15, 3 }
   0xe   : > { %v1001_v7 = vand.u32 4294901760, %v297_v3  ;;  %v1003_v8 = vand.u32 4294901760, %v300_v4  ;;  %268 = vperm.xlu1 %893, %v252_v2   ;;  %v288_v9 = vsel %vm286_vm0, %v244_v6, 0  ;;  %v245_v11 = vld [vmem:[%s1198_s1 + $0x8] sm:$0xff]  ;;  %894 = vset.pattern.permute.xlu2 %v943_v5  ;;  %v250_v18 = vld [vmem:[%s1199_s2] sm:$0xff]  ;;  %s228_s12 = scalar_lea.vmem %s1197_s0, %s1018_s7  ;;  %v303_v20 = vsel %vm286_vm0, %v249_v10, 0  ;;  %s235_s26 = scalar_lea.vmem %s1200_s3, %s1018_s7 }
   0xf   : > { %v1012_v12 = vand.u32 4294901760, %v288_v9  ;;  %v291_v13 = vsel %vm286_vm0, %v245_v11, 0  ;;  %258 = vperm.xlu0 %892, %v250_v18   ;;  %v243_v21 = vld [vmem:[%s228_s12] sm:$0xff]  ;;  %v294_v24 = vsel %vm286_vm0, %v246_v14, 0  ;;  %v253_v27 = vld [vmem:[%s1199_s2 + $0x18] sm:$0xff]  ;;  %v1050_v30 = vand.u32 4294901760, %v303_v20  ;;  %s242_s29 = scalar_lea.vmem %s1201_s4, %s1018_s7 }
  0x10   : > { %v1021_v15 = vsub.f32 %v297_v3, %v1001_v7  ;;  %v1024_v16 = vsub.f32 %v300_v4, %v1003_v8  ;;  %v1026_v17 = vand.u32 4294901760, %v291_v13  ;;  %v320_v25 = vand.u32 4294901760, %v243_v21  ;;  %v251_v40 = vld [vmem:[%s1199_s2 + $0x8] sm:$0xff]  ;;  %v254_v53 = vld [vmem:[%s1199_s2 + $0x20] sm:$0xff] }
  0x11   : > { %v1036_v19 = vsub.f32 %v288_v9, %v1012_v12  ;;  %v338_v34 = vand.u32 4294901760, %v294_v24  ;;  %v363_v39 = vsub.f32 %v303_v20, %v1050_v30  ;;  %278 = vperm.xlu2 %894, %v254_v53   ;;  %v255_v54 = vld [vmem:[%s1199_s2 + $0x28] sm:$0xff] }
  0x12   : > { %v348_v22 = vand.u32 4294901760, %v1021_v15  ;;  %v331_v23 = vsub.f32 %v291_v13, %v1026_v17  ;;  %v356_v29 = vand.u32 4294901760, %v1024_v16  ;;  %865 = vmatpush.msra.mxu2 %v320_v25  ;;  %v387_v31 = vsub.f32 %v243_v21, %v320_v25  ;;  %321 = vmatpush.msra.mxu0 %v320_v25 }
  0x13   : > { %v324_v26 = vand.u32 4294901760, %v1036_v19  ;;  %v339_v43 = vsub.f32 %v294_v24, %v338_v34  ;;  %v364_v46 = vand.u32 4294901760, %v363_v39 }
  0x14   : > { %v349_v28 = vsub.f32 %v1021_v15, %v348_v22  ;;  %v332_v33 = vand.u32 4294901760, %v331_v23  ;;  %434 = vmatpush.msrb.mxu2 %v387_v31  ;;  %v388_v36 = vand.u32 4294901760, %v387_v31  ;;  %v357_v38 = vsub.f32 %v1024_v16, %v356_v29 }
  0x15   : > { %v325_v32 = vsub.f32 %v1036_v19, %v324_v26  ;;  %v340_v48 = vand.u32 4294901760, %v339_v43  ;;  %v365_v49 = vsub.f32 %v363_v39, %v364_v46 }
  0x16   : > { %v350_v35 = vand.u32 4294901760, %v349_v28  ;;  %273 = vperm.xlu1 %893, %v253_v27   ;;  %v389_v41 = vsub.f32 %v387_v31, %v388_v36  ;;  %v333_v42 = vsub.f32 %v331_v23, %v332_v33  ;;  %538 = vmatpush.msrb.mxu0 %v388_v36  ;;  %v358_v45 = vand.u32 4294901760, %v357_v38 }
  0x17   : > { %v326_v37 = vand.u32 4294901760, %v325_v32  ;;  %263 = vperm.xlu0 %892, %v251_v40   ;;  %v341_v50 = vsub.f32 %v339_v43, %v340_v48  ;;  %v366_v51 = vand.u32 4294901760, %v365_v49 }
  0x18   : > { %351 = vmatmul.f32.vlgmr.msra.gmra.mxu2 %v350_v35  ;;  %v390_v44 = vand.u32 4294901760, %v389_v41  ;;  %v334_v47 = vand.u32 4294901760, %v333_v42 }
  0x19   : > { %327 = vmatmul.f32.vlgmr.msra.gmra.mxu0 %v326_v37  ;;  %v342_v52 = vand.u32 4294901760, %v341_v50  ;;  %283 = vperm.xlu2 %894, %v255_v54  }
  0x1a   : > { %866 = vmatpush.msra.mxu3 %v390_v44  ;;  %391 = vmatpush.msra.mxu1 %v390_v44 }
  0x1b   : > { %405 = vmatmul.f32.vlgmr.msra.gmra.mxu3 %v1001_v7  ;;  %393 = vmatmul.f32.vlgmr.msra.gmra.mxu1 %v1012_v12 }
  0x1c   : > { %482 = vmatpush.msrb.mxu3 %v320_v25  ;;  %580 = vmatpush.msrb.mxu1 %v320_v25 }
  0x20   : > { %359 = vmatmul.f32.gmra.mxu2 %v358_v45 }
  0x21   : > { %335 = vmatmul.f32.gmra.mxu0 %v334_v47 }
  0x23   : > { %409 = vmatmul.f32.gmra.mxu3 %v1003_v8  ;;  %397 = vmatmul.f32.gmra.mxu1 %v1026_v17 }
  0x28   : > { %367 = vmatmul.f32.gmra.mxu2 %v366_v51 }
  0x29   : > { %343 = vmatmul.f32.gmra.mxu0 %v342_v52 }
  0x2b   : > { %413 = vmatmul.f32.gmra.mxu3 %v1050_v30  ;;  %401 = vmatmul.f32.gmra.mxu1 %v338_v34 }
  0x30   : > { %437 = vmatmul.f32.vlgmr.msrb.gmra.mxu2 %v1036_v19 }
  0x31   : > { %540 = vmatmul.f32.vlgmr.msrb.gmra.mxu0 %v1012_v12 }
  0x33   : > { %486 = vmatmul.f32.vlgmr.msrb.gmra.mxu3 %v324_v26  ;;  %582 = vmatmul.f32.vlgmr.msrb.gmra.mxu1 %v1012_v12 }
  0x38   : > { %442 = vmatmul.f32.gmra.mxu2 %v331_v23 }
  0x39   : > { %544 = vmatmul.f32.gmra.mxu0 %v1026_v17 }
  0x3b   : > { %492 = vmatmul.f32.gmra.mxu3 %v332_v33  ;;  %586 = vmatmul.f32.gmra.mxu1 %v1026_v17 }
  0x40   : > { %447 = vmatmul.f32.gmra.mxu2 %v339_v43 }
  0x41   : > { %548 = vmatmul.f32.gmra.mxu0 %v338_v34 }
  0x43   : > { %498 = vmatmul.f32.gmra.mxu3 %v340_v48  ;;  %590 = vmatmul.f32.gmra.mxu1 %v338_v34 }
  0x48   : > { %452 = vmatmul.f32.gmra.mxu2 %v1021_v15 }
  0x49   : > { %552 = vmatmul.f32.gmra.mxu0 %v1001_v7 }
  0x4b   : > { %504 = vmatmul.f32.gmra.mxu3 %v348_v22  ;;  %594 = vmatmul.f32.gmra.mxu1 %v1001_v7 }
  0x50   : > { %457 = vmatmul.f32.gmra.mxu2 %v1024_v16 }
  0x51   : > { %556 = vmatmul.f32.gmra.mxu0 %v1003_v8 }
  0x53   : > { %510 = vmatmul.f32.gmra.mxu3 %v356_v29  ;;  %598 = vmatmul.f32.gmra.mxu1 %v1003_v8 }
  0x58   : > { %462 = vmatmul.f32.gmra.mxu2 %v363_v39 }
  0x59   : > { %560 = vmatmul.f32.gmra.mxu0 %v1050_v30 }
  0x5b   : > { %516 = vmatmul.f32.gmra.mxu3 %v364_v46  ;;  %602 = vmatmul.f32.gmra.mxu1 %v1050_v30 }
  0x6b   : > { %v279_v43 = vpop.permute.xlu2 %278 }
  0x80   : > { %v269_v16 = vpop.permute.xlu1 %268 }
  0x81   : > { %v259_v2 = vpop.permute.xlu0 %258 }
  0x88   : > { %v274_v30 = vpop.permute.xlu1 %273 }
  0x89   : > { %v264_v9 = vpop.permute.xlu0 %263 }
  0x96   : > { %v328_v55 = vpop.f32.mrf.mxu0 }
  0x97   : > { %v329_v5 = vadd.f32 %v328_v55, %v259_v2 }
  0x98   : > { %v394_v57 = vpop.f32.mrf.mxu1 }
  0x99   : > { %v395_v8 = vadd.f32 %v394_v57, %v329_v5 }
  0x9b   : > { %v352_v56 = vpop.f32.mrf.mxu2 }
  0x9c   : > { %v353_v36 = vadd.f32 %v352_v56, %v274_v30 }
  0x9e   : > { %v336_v58 = vpop.f32.mrf.mxu0  ;;  %v406_v59 = vpop.f32.mrf.mxu3 }
  0x9f   : > { %v337_v12 = vadd.f32 %v336_v58, %v264_v9  ;;  %v407_v40 = vadd.f32 %v406_v59, %v353_v36 }
  0xa0   : > { %v398_v61 = vpop.f32.mrf.mxu1 }
  0xa1   : > { %v399_v17 = vadd.f32 %v398_v61, %v337_v12 }
  0xa3   : > { %v360_v60 = vpop.f32.mrf.mxu2 }
  0xa4   : > { %v361_v52 = vadd.f32 %v360_v60, %v279_v43 }
  0xa6   : > { %v344_v62 = vpop.f32.mrf.mxu0  ;;  %v1088_v63 = vpop.f32.mrf.mxu3 }
  0xa7   : > { %v345_v22 = vadd.f32 %v344_v62, %v269_v16  ;;  %v411_v58 = vadd.f32 %v1088_v63, %v361_v52 }
  0xa8   : > { %v402_v1 = vpop.f32.mrf.mxu1 }
  0xa9   : > { %v403_v27 = vadd.f32 %v402_v1, %v345_v22  ;;  %v284_v1 = vpop.permute.xlu2 %283 }
  0xab   : > { %v1090_v0 = vpop.f32.mrf.mxu2 }
  0xae   : > { %v1092_v3 = vpop.f32.mrf.mxu3  ;;  %v541_v4 = vpop.f32.mrf.mxu0 }
  0xb0   : > { %v583_v7 = vpop.f32.mrf.mxu1 }
  0xb3   : > { %v438_v6 = vpop.f32.mrf.mxu2 }
  0xb4   : > { %v439_v10 = vadd.f32 %v438_v6, %v395_v8 }
  0xb6   : > { %v487_v11 = vpop.f32.mrf.mxu3  ;;  %v545_v15 = vpop.f32.mrf.mxu0 }
  0xb7   : > { %v488_v13 = vadd.f32 %v487_v11, %v439_v10 }
  0xb8   : > { %v587_v18 = vpop.f32.mrf.mxu1 }
  0xb9   : > { %v542_v19 = vadd.f32 %v541_v4, %v488_v13 }
  0xbb   : > { %v443_v14 = vpop.f32.mrf.mxu2  ;;  %v584_v24 = vadd.f32 %v583_v7, %v542_v19  ;;  %v369_v7 = vadd.f32 %v1090_v0, %v284_v1 }
  0xbc   : > { %v444_v20 = vadd.f32 %v443_v14, %v399_v17 }
  0xbd   : > { %v857_v31 = vmul.f32 -1.442695, %v584_v24  ;;  %v415_v14 = vadd.f32 %v1092_v3, %v369_v7 }
  0xbe   : > { %v493_v21 = vpop.f32.mrf.mxu3  ;;  %v549_v29 = vpop.f32.mrf.mxu0 }
  0xbf   : > { %v494_v23 = vadd.f32 %v493_v21, %v444_v20 }
  0xc0   : > { %v591_v34 = vpop.f32.mrf.mxu1 }
  0xc1   : > { %v546_v26 = vadd.f32 %v545_v15, %v494_v23 }
  0xc3   : > { %v448_v25 = vpop.f32.mrf.mxu2  ;;  %v588_v28 = vadd.f32 %v587_v18, %v546_v26 }
  0xc4   : > { %v449_v32 = vadd.f32 %v448_v25, %v403_v27 }
  0xc5   : > { %v858_v33 = vmul.f32 -1.442695, %v588_v28 }
  0xc6   : > { %v499_v35 = vpop.f32.mrf.mxu3  ;;  %v553_v46 = vpop.f32.mrf.mxu0 }
  0xc7   : > { %895 = vpow2.f32 %v858_v33  ;;  %v500_v37 = vadd.f32 %v499_v35, %v449_v32 }
  0xc8   : > { %897 = vpow2.f32 %v857_v31  ;;  %v595_v50 = vpop.f32.mrf.mxu1 }
  0xc9   : > { %v550_v39 = vadd.f32 %v549_v29, %v500_v37 }
  0xcb   : > { %v453_v38 = vpop.f32.mrf.mxu2  ;;  %v592_v41 = vadd.f32 %v591_v34, %v550_v39 }
  0xcc   : > { %v454_v44 = vadd.f32 %v453_v38, %v407_v40 }
  0xcd   : > { %v896_v42 = vpop.eup %895  ;;  %v859_v45 = vmul.f32 -1.442695, %v592_v41 }
  0xce   : > { %v898_v47 = vpop.eup %897  ;;  %v505_v48 = vpop.f32.mrf.mxu3  ;;  %v1094_v51 = vadd.f32 1.0, %v896_v42 }
  0xcf   : > { %899 = vpow2.f32 %v859_v45  ;;  %v506_v49 = vadd.f32 %v505_v48, %v454_v44  ;;  %v1096_v53 = vadd.f32 1.0, %v898_v47  ;;  %v557_v60 = vpop.f32.mrf.mxu0 }
  0xd0   : > { %901 = vrcp.f32 %v1094_v51  ;;  %v599_v5 = vpop.f32.mrf.mxu1  ;;  %v654_v38 = vand.u32 2147483647, %v1094_v51  ;;  %v656_v39 = vand.u32 2147483648, %v1094_v51  ;;  %vm650_vm3 = vweird.f32 %v1094_v51 }
  0xd1   : > { %v554_v54 = vadd.f32 %v553_v46, %v506_v49  ;;  %903 = vrcp.f32 %v1096_v53  ;;  %vm635_vm4 = vweird.f32 %v1096_v53  ;;  %v639_v41 = vand.u32 2147483647, %v1096_v53 }
  0xd2   : > { %v641_v42 = vand.u32 2147483648, %v1096_v53  ;;  %vm655_vm8 = vcmp.eq.f32.partialorder %v654_v38, 8.507059e+37  ;;  %v657_v48 = vor.u32 1.1754944e-38, %v656_v39 }
  0xd3   : > { %v458_v55 = vpop.f32.mrf.mxu2  ;;  %v596_v56 = vadd.f32 %v595_v50, %v554_v54  ;;  %vm640_vm11 = vcmp.eq.f32.partialorder %v639_v41, 8.507059e+37 }
  0xd4   : > { %v459_v2 = vadd.f32 %v458_v55, %v411_v58 }
  0xd5   : > { %v900_v57 = vpop.eup %899  ;;  %v860_v59 = vmul.f32 -1.442695, %v596_v56 }
  0xd6   : > { %v1101_v61 = vadd.f32 1.0, %v900_v57  ;;  %v511_v62 = vpop.f32.mrf.mxu3  ;;  %v1104_v6 = vpop.eup %901 }
  0xd7   : > { %905 = vpow2.f32 %v860_v59  ;;  %v512_v4 = vadd.f32 %v511_v62, %v459_v2  ;;  %v1107_v8 = vpop.eup %903  ;;  %v646_v10 = vmul.f32 %v1104_v6, %v1094_v51  ;;  %v561_v21 = vpop.f32.mrf.mxu0  ;;  %vm651_vm2 = vweird.f32 %v1104_v6 }
  0xd8   : > { %907 = vrcp.f32 %v1101_v61  ;;  %v631_v15 = vmul.f32 %v1107_v8, %v1096_v53  ;;  %v603_v3 = vpop.f32.mrf.mxu1  ;;  %vm636_vm1 = vweird.f32 %v1107_v8  ;;  %vm1146_vm5 = vmor %vm650_vm3, %vm651_vm2  ;;  %v671_v49 = vand.u32 2147483648, %v1101_v61 }
  0xd9   : > { %v558_v63 = vadd.f32 %v557_v60, %v512_v4  ;;  %v647_v19 = vsub.f32 1.0, %v646_v10  ;;  %vm1152_vm6 = vmor %vm635_vm4, %vm636_vm1  ;;  %vm665_vm9 = vweird.f32 %v1101_v61  ;;  %v669_v50 = vand.u32 2147483647, %v1101_v61 }
  0xda   : > { %v632_v22 = vsub.f32 1.0, %v631_v15  ;;  %v642_v53 = vor.u32 1.1754944e-38, %v641_v42  ;;  %v672_v1 = vor.u32 1.1754944e-38, %v671_v49 }
  0xdb   : > { %v463_v11 = vpop.f32.mrf.mxu2  ;;  %v600_v12 = vadd.f32 %v599_v5, %v558_v63  ;;  %v648_v25 = vmul.f32 %v1104_v6, %v647_v19  ;;  %vm670_vm15 = vcmp.eq.f32.partialorder %v669_v50, 8.507059e+37 }
  0xdc   : > { %v464_v18 = vadd.f32 %v463_v11, %v415_v14  ;;  %v633_v28 = vmul.f32 %v1107_v8, %v632_v22 }
  0xdd   : > { %v906_v9 = vpop.eup %905  ;;  %v861_v0 = vmul.f32 -1.442695, %v600_v12  ;;  %v649_v34 = vadd.f32 %v1104_v6, %v648_v25 }
  0xde   : > { %v1111_v13 = vpop.eup %907  ;;  %v1116_v16 = vadd.f32 1.0, %v906_v9  ;;  %v517_v17 = vpop.f32.mrf.mxu3  ;;  %v634_v37 = vadd.f32 %v1107_v8, %v633_v28 }
  0xdf   : > { %v661_v20 = vmul.f32 %v1111_v13, %v1101_v61  ;;  %v518_v23 = vadd.f32 %v517_v17, %v464_v18  ;;  %v653_v45 = vsel %vm1146_vm5, %v1104_v6, %v649_v34  ;;  %vm666_vm7 = vweird.f32 %v1111_v13 }
  0xe0   : > { %909 = vrcp.f32 %v1116_v16  ;;  %v638_v47 = vsel %vm1152_vm6, %v1107_v8, %v634_v37  ;;  %v658_v54 = vsel %vm655_vm8, %v657_v48, %v653_v45  ;;  %vm1169_vm12 = vmor %vm665_vm9, %vm666_vm7  ;;  %v686_v56 = vand.u32 2147483648, %v1116_v16 }
  0xe1   : > { %911 = vpow2.f32 %v861_v0  ;;  %v562_v24 = vadd.f32 %v561_v21, %v518_v23  ;;  %v662_v26 = vsub.f32 1.0, %v661_v20  ;;  %vm680_vm13 = vweird.f32 %v1116_v16 }
  0xe2   : > { %v684_v59 = vand.u32 2147483647, %v1116_v16  ;;  %v643_v62 = vsel %vm640_vm11, %v642_v53, %v638_v47  ;;  %v723_v60 = vmul.f32 %v658_v54, %v658_v54  ;;  %v687_v7 = vor.u32 1.1754944e-38, %v686_v56 }
  0xe3   : > { %v604_v29 = vadd.f32 %v603_v3, %v562_v24  ;;  %v663_v35 = vmul.f32 %v1111_v13, %v662_v26  ;;  %v721_v11 = vmul.f32 %v643_v62, %v643_v62 }
  0xe4   : > { %vm685_vm0 = vcmp.eq.f32.partialorder %v684_v59, 8.507059e+37 }
  0xe5   : > { %v862_v33 = vmul.f32 -1.442695, %v604_v29  ;;  %720 = vst [vmem:[%s235_s26] sm:$0xff] %v604_v29  ;;  %v664_v46 = vadd.f32 %v1111_v13, %v663_v35  ;;  %v724_v15 = vadd.f32 %v723_v60, %v721_v11 }
  0xe6   : > { %v1126_v27 = vpop.eup %909 }
  0xe7   : > { %v912_v30 = vpop.eup %911  ;;  %v676_v31 = vmul.f32 %v1126_v27, %v1116_v16  ;;  %vm681_vm10 = vweird.f32 %v1126_v27  ;;  %v668_v58 = vsel %vm1169_vm12, %v1111_v13, %v664_v46 }
  0xe8   : > { %v1132_v32 = vadd.f32 1.0, %v912_v30  ;;  %vm682_vm14 = vmor %vm680_vm13, %vm681_vm10  ;;  %v673_v6 = vsel %vm670_vm15, %v672_v1, %v668_v58 }
  0xe9   : > { %v677_v36 = vsub.f32 1.0, %v676_v31  ;;  %v725_v12 = vmul.f32 %v673_v6, %v673_v6 }
  0xea   : > { %913 = vrcp.f32 %v1132_v32  ;;  %v701_v8 = vand.u32 2147483648, %v1132_v32  ;;  %v699_v9 = vand.u32 2147483647, %v1132_v32  ;;  %vm695_vm2 = vweird.f32 %v1132_v32 }
  0xeb   : > { %v678_v40 = vmul.f32 %v1126_v27, %v677_v36  ;;  %915 = vpow2.f32 %v862_v33  ;;  %v726_v19 = vadd.f32 %v725_v12, %v724_v15 }
  0xec   : > { %v702_v14 = vor.u32 1.1754944e-38, %v701_v8  ;;  %vm700_vm4 = vcmp.eq.f32.partialorder %v699_v9, 8.507059e+37 }
  0xed   : > { %v679_v51 = vadd.f32 %v1126_v27, %v678_v40 }
  0xef   : > { %v683_v4 = vsel %vm682_vm14, %v1126_v27, %v679_v51 }
  0xf0   : > { %v914_v52 = vpop.eup %913  ;;  %v688_v10 = vsel %vm685_vm0, %v687_v7, %v683_v4 }
  0xf1   : > { %v916_v57 = vpop.eup %915  ;;  %v691_v61 = vmul.f32 %v914_v52, %v1132_v32  ;;  %vm696_vm1 = vweird.f32 %v914_v52  ;;  %v727_v16 = vmul.f32 %v688_v10, %v688_v10 }
  0xf2   : > { %v629_v2 = vadd.f32 1.0, %v916_v57  ;;  %vm697_vm3 = vmor %vm695_vm2, %vm696_vm1 }
  0xf3   : > { %v692_v5 = vsub.f32 1.0, %v691_v61  ;;  %v728_v22 = vadd.f32 %v727_v16, %v726_v19 }
  0xf4   : > { %917 = vrcp.f32 %v629_v2  ;;  %v716_v3 = vand.u32 2147483648, %v629_v2  ;;  %v714_v26 = vand.u32 2147483647, %v629_v2  ;;  %vm710_vm6 = vweird.f32 %v629_v2 }
  0xf5   : > { %v693_v63 = vmul.f32 %v914_v52, %v692_v5 }
  0xf6   : > { %v717_v28 = vor.u32 1.1754944e-38, %v716_v3  ;;  %vm715_vm8 = vcmp.eq.f32.partialorder %v714_v26, 8.507059e+37 }
  0xf7   : > { %v694_v13 = vadd.f32 %v914_v52, %v693_v63 }
  0xf9   : > { %v698_v0 = vsel %vm697_vm3, %v914_v52, %v694_v13 }
  0xfa   : > { %v918_v17 = vpop.eup %917  ;;  %v703_v18 = vsel %vm700_vm4, %v702_v14, %v698_v0 }
  0xfb   : > { %v729_v20 = vmul.f32 %v703_v18, %v703_v18  ;;  %v706_v21 = vmul.f32 %v918_v17, %v629_v2  ;;  %vm711_vm5 = vweird.f32 %v918_v17 }
  0xfc   : > { %vm712_vm7 = vmor %vm710_vm6, %vm711_vm5 }
  0xfd   : > { %v707_v23 = vsub.f32 1.0, %v706_v21  ;;  %v730_v24 = vadd.f32 %v729_v20, %v728_v22 }
  0xff   : > { %v708_v25 = vmul.f32 %v918_v17, %v707_v23  ;;  %v731_v29 = vmul.f32 0.2, %v730_v24 }
 0x101   : > { %v709_v27 = vadd.f32 %v918_v17, %v708_v25 }
 0x103   : > { %v713_v30 = vsel %vm712_vm7, %v918_v17, %v709_v27 }
 0x104   : > { %v718_v31 = vsel %vm715_vm8, %v717_v28, %v713_v30 }
 0x105   : > { %v732_v32 = vsub.f32 %v731_v29, %v718_v31 }
 0x107   : > { %733 = vst [vmem:[%s242_s29] sm:$0xff] %v732_v32 }
 0x108 PF: > { %s15_s17 = sadd.s32 1, %s941_s17   ;;  %s1208_s15 = smov %s937_s16 }
 0x109   : > { %p12_p5 = scmp.ge.s32.totalorder %s15_s17, 4   ;;  %s1209_s16 = smov %s1211_s18 }
 0x10b   :  { %14 = sbr.rel (!%p12_p5) target bundleno = 2 (0x2), region = 74 }

</bundles_post_ra>
